<compile_context>
chip_gen: v7x
topology: tpu7x:2x2x1
jax: 0.10.0
libtpu: 0.0.40
codegen_flags: <defaults>
</compile_context>

<pallas_src>
import functools

import jax
import jax.numpy as jnp
from jax.experimental import pallas as pl
from jax.experimental.pallas import tpu as pltpu

LANES = 128
SUBLANES = 8
MAX_BLOCK_M = 4096  # 4096*128*4 B = 2 MiB per f32 buffer (x2 inputs x2 bufs)
VMEM_LIMIT_BYTES = 32 * 1024 * 1024


def _round_up(x, m):
    return (x + m - 1) // m * m


def _sublane_tile(dtype):
    # Minimal row granularity for the (sublane, lane) tiling of this dtype:
    # 8 rows for 4-byte, 16 for 2-byte, 32 for 1-byte elements.
    return max(8, 32 // jnp.dtype(dtype).itemsize)


def _pick_k(block_m):
    # Number of independent accumulator vregs for the row fold.
    for k in (8, 4, 2, 1):
        if block_m % (SUBLANES * k) == 0:
            return k
    return 1


def _bce_partial_kernel(pred_ref, truth_ref, out_ref, *, block_m, k_acc,
                        valid_rows, single_log):
    p = pred_ref[...].astype(jnp.float32)
    t = truth_ref[...]

    if single_log:
        # Integer/bool labels (t in {0,1}): one transcendental per element.
        pick = jnp.where(t != 0, p, 1.0 - p)
        elem = -jnp.maximum(jnp.log(pick), -100.0)
    else:
        tf = t.astype(jnp.float32)
        log_p = jnp.maximum(jnp.log(p), -100.0)
        log_1mp = jnp.maximum(jnp.log(1.0 - p), -100.0)
        elem = -(tf * log_p + (1.0 - tf) * log_1mp)

    if valid_rows is not None:
        # Last grid block is ragged: rows >= valid_rows hold unspecified data
        # (possibly NaN after the log) -> select them away (no NaN*0 hazard).
        i = pl.program_id(0)
        row = jax.lax.broadcasted_iota(jnp.int32, (block_m, LANES), 0) + i * block_m
        elem = jnp.where(row < valid_rows, elem, 0.0)

    # Fold rows down to one (8,128) vreg of per-lane partial sums using k_acc
    # independent accumulation chains (pure VPU, no cross-lane XLU reduce).
    chunk = block_m // (SUBLANES * k_acc)
    view = elem.reshape(chunk, k_acc, SUBLANES, LANES)
    partial = view.sum(axis=0).sum(axis=0)
    out_ref[...] = partial.reshape(1, SUBLANES, LANES)


def kt_loss(pred, truth):
    """Mean binary cross-entropy computed with a Pallas TPU kernel."""
    if not jnp.issubdtype(pred.dtype, jnp.floating):
        pred = pred.astype(jnp.float32)
    if truth.dtype == jnp.bool_:
        truth = truth.astype(jnp.int8)  # 1-byte labels keep HBM traffic minimal
    single_log = jnp.issubdtype(truth.dtype, jnp.integer)

    n = pred.size
    m = n // LANES          # full 128-wide rows handled by the kernel
    rem = n - m * LANES     # <128-element flat tail handled in plain JAX

    total = jnp.float32(0.0)

    if m > 0:
        if rem == 0:
            pred2d = pred.reshape(m, LANES)      # free reshape, no pad, no copy
            truth2d = truth.reshape(m, LANES)
        else:
            # TODO(synk): prefix slice may materialize a copy for non-128-aligned
            # sizes; still avoids the full pad-and-rewrite of both inputs.
            pred2d = pred.reshape(-1)[: m * LANES].reshape(m, LANES)
            truth2d = truth.reshape(-1)[: m * LANES].reshape(m, LANES)

        gran = max(_sublane_tile(pred2d.dtype), _sublane_tile(truth2d.dtype))
        # Aim for >=2 grid steps so both v7x TensorCores get work.
        block_m = max(gran, min(MAX_BLOCK_M, _round_up(max(pl.cdiv(m, 2), 1), gran)))
        grid0 = pl.cdiv(m, block_m)
        valid_rows = m if (m % block_m) != 0 else None
        k_acc = _pick_k(block_m)

        bytes_in = (pred2d.size * pred2d.dtype.itemsize
                    + truth2d.size * truth2d.dtype.itemsize)
        cost = pl.CostEstimate(
            flops=(4 if single_log else 7) * m * LANES,
            transcendentals=(1 if single_log else 2) * m * LANES,
            bytes_accessed=bytes_in + grid0 * SUBLANES * LANES * 4,
        )

        partials = pl.pallas_call(
            functools.partial(
                _bce_partial_kernel,
                block_m=block_m,
                k_acc=k_acc,
                valid_rows=valid_rows,
                single_log=single_log,
            ),
            out_shape=jax.ShapeDtypeStruct((grid0, SUBLANES, LANES), jnp.float32),
            grid_spec=pltpu.PrefetchScalarGridSpec(
                num_scalar_prefetch=0,
                grid=(grid0,),
                in_specs=[
                    pl.BlockSpec((block_m, LANES), lambda i: (i, 0)),
                    pl.BlockSpec((block_m, LANES), lambda i: (i, 0)),
                ],
                out_specs=pl.BlockSpec((1, SUBLANES, LANES), lambda i: (i, 0, 0)),
            ),
            compiler_params=pltpu.CompilerParams(
                dimension_semantics=("parallel",),
                vmem_limit_bytes=VMEM_LIMIT_BYTES,
            ),
            cost_estimate=cost,
        )(pred2d, truth2d)

        total = total + jnp.sum(partials, dtype=jnp.float32)

    if rem > 0:
        p_t = pred.reshape(-1)[m * LANES:].astype(jnp.float32)
        t_t = truth.reshape(-1)[m * LANES:].astype(jnp.float32)
        tail = -(t_t * jnp.maximum(jnp.log(p_t), -100.0)
                 + (1.0 - t_t) * jnp.maximum(jnp.log(1.0 - p_t), -100.0))
        total = total + jnp.sum(tail, dtype=jnp.float32)

    return (total / jnp.float32(n)).astype(jnp.float32)


if __name__ == "__main__":
    key = jax.random.PRNGKey(0)
    k1, k2 = jax.random.split(key)

    # Small shapes consistent with a generic (pred, truth) pair: [2, 4, 16, 16]
    pred = jax.nn.sigmoid(jax.random.normal(k1, (2, 4, 16, 16), jnp.float32))
    truth = (jax.random.uniform(k2, (2, 4, 16, 16)) > 0.5).astype(jnp.int32)

    loss = kt_loss(pred, truth)
    jax.block_until_ready(loss)

    # Reference check in plain JAX (same clamped-log BCE, mean reduction).
    t = truth.astype(jnp.float32)
    ref = jnp.mean(
        -(t * jnp.maximum(jnp.log(pred), -100.0)
          + (1.0 - t) * jnp.maximum(jnp.log(1.0 - pred), -100.0))
    )
    assert jnp.allclose(loss, ref, atol=1e-5, rtol=1e-5), (loss, ref)

    print("KERNEL_OK")
</pallas_src>

<mosaic_0001>
module attributes {stable_mosaic.version = 11 : i64} {
  func.func @_bce_partial_kernel(%arg0: i32, %arg1: memref<8x128xf32, #tpu.memory_space<vmem>>, %arg2: memref<8x128xi32, #tpu.memory_space<vmem>>, %arg3: memref<1x8x128xf32, #tpu.memory_space<vmem>>) attributes {dimension_semantics = [#tpu.dimension_semantics<parallel>], iteration_bounds = array<i64: 2>, scalar_prefetch = 0 : i64, scratch_operands = 0 : i64, tpu.core_type = #tpu.core_type<tc>, window_params = [{transform_indices = @transform_0, window_bounds = array<i64: 8, 128>}, {transform_indices = @transform_1, window_bounds = array<i64: 8, 128>}, {transform_indices = @transform_2, window_bounds = array<i64: 1, 8, 128>}]} {
    %c0 = arith.constant 0 : index
    %c0_0 = arith.constant 0 : index
    %0 = vector.load %arg1[%c0, %c0_0] : memref<8x128xf32, #tpu.memory_space<vmem>>, vector<8x128xf32>
    %c0_1 = arith.constant 0 : index
    %c0_2 = arith.constant 0 : index
    %1 = vector.load %arg2[%c0_1, %c0_2] : memref<8x128xi32, #tpu.memory_space<vmem>>, vector<8x128xi32>
    %c0_i32 = arith.constant 0 : i32
    %2 = vector.broadcast %c0_i32 : i32 to vector<8x128xi32>
    %3 = arith.cmpi ne, %1, %2 : vector<8x128xi32>
    %cst = arith.constant 1.000000e+00 : f32
    %4 = vector.broadcast %cst : f32 to vector<8x128xf32>
    %5 = arith.subf %4, %0 : vector<8x128xf32>
    %6 = arith.select %3, %0, %5 : vector<8x128xi1>, vector<8x128xf32>
    %7 = math.log %6 : vector<8x128xf32>
    %cst_3 = arith.constant -1.000000e+02 : f32
    %8 = vector.broadcast %cst_3 : f32 to vector<8x128xf32>
    %9 = arith.maximumf %7, %8 : vector<8x128xf32>
    %cst_4 = arith.constant 0.000000e+00 : f32
    %10 = vector.broadcast %cst_4 : f32 to vector<8x128xf32>
    %11 = arith.subf %10, %9 : vector<8x128xf32>
    %12 = vector.shape_cast %11 : vector<8x128xf32> to vector<1x1x8x128xf32>
    %cst_5 = arith.constant dense<0.000000e+00> : vector<1x8x128xf32>
    %13 = vector.multi_reduction <add>, %12, %cst_5 [0] : vector<1x1x8x128xf32> to vector<1x8x128xf32>
    %cst_6 = arith.constant dense<0.000000e+00> : vector<8x128xf32>
    %14 = vector.multi_reduction <add>, %13, %cst_6 [0] : vector<1x8x128xf32> to vector<8x128xf32>
    %15 = vector.shape_cast %14 : vector<8x128xf32> to vector<1x8x128xf32>
    %c0_7 = arith.constant 0 : index
    %c0_8 = arith.constant 0 : index
    %c0_9 = arith.constant 0 : index
    %16 = vector.load %arg3[%c0_7, %c0_8, %c0_9] : memref<1x8x128xf32, #tpu.memory_space<vmem>>, vector<1x8x128xf32>
    tpu.vector_store %arg3[%c0_7, %c0_8, %c0_9], %15 {strides = array<i32>} : memref<1x8x128xf32, #tpu.memory_space<vmem>>, vector<1x8x128xf32>,
    return
  }
  func.func @transform_0(%arg0: i32) -> (i32, i32) {
    %c0_i32 = arith.constant 0 : i32
    %c0_i32_0 = arith.constant 0 : i32
    return %arg0, %c0_i32 : i32, i32
  }
  func.func @transform_1(%arg0: i32) -> (i32, i32) {
    %c0_i32 = arith.constant 0 : i32
    %c0_i32_0 = arith.constant 0 : i32
    return %arg0, %c0_i32 : i32, i32
  }
  func.func @transform_2(%arg0: i32) -> (i32, i32, i32) {
    %c0_i32 = arith.constant 0 : i32
    %c0_i32_0 = arith.constant 0 : i32
    %c0_i32_1 = arith.constant 0 : i32
    return %arg0, %c0_i32, %c0_i32_0 : i32, i32, i32
  }
}

</mosaic_0001>

<bundles_post_ra>
// kernel: tpu_custom_call.1
= control target key start
LH: loop header
LB: loop body
LE: loop exit
PB: predicated region body
PF: predicated region fallthrough
CT: control target
= control target key end

     0   :  { %7 = vsyncpa [#allocation3], 0  ;;  %s742_s0 = inlined_call_operand.hbm [shape: f32[16,128], index: 0, kind: input, shape index: {}]   ;;  %s743_s1 = inlined_call_operand.hbm [shape: s32[16,128], index: 1, kind: input, shape index: {}]   ;;  %s744_s2 = inlined_call_operand.hbm [shape: f32[2,8,128], index: 2, kind: output, shape index: {}]  }
   0x1   :  { %9 = vsyncpa [#allocation3 + $0x1], 0 }
   0x2   :  { %10 = vsyncpa [#allocation6], 0 }
   0x3   :  { %12 = vsyncpa [#allocation6 + $0x1], 0 }
   0x4   :  { %13 = vsyncpa [#allocation4], 0 }
   0x5   :  { %15 = vsyncpa [#allocation4 + $0x1], 0  ;;  %s533_s9 = smov 0   ;;  %s535_s10 = smov 0  }
   0x6   :  { %s537_s11 = smov 0   ;;  %s539_s12 = smov 0  }
   0x7 LB: > { %s554_s13 = sadd.s32 4294967295, %s513_s12   ;;  %s315_s14 = sadd.s32 4294967294, %s513_s12   ;;  %s513_s12 = sphi %s539_s12, %s763_s12   ;;  %s509_s11 = sphi %s537_s11, %s762_s11   ;;  %s505_s10 = sphi %s535_s10, %s761_s10   ;;  %s501_s9 = sphi %s533_s9, %s760_s9  }
   0x8   : > { %s558_s15 = sadd.s32 1, %s513_s12   ;;  %s28_s16 = sadd.s32 1, %s509_s11 }
   0x9   : > { %s25_s17 = ssub.s32 %s513_s12, %s558_s15  ;;  %p35_p0 = scmp.ne.s32.totalorder %s509_s11, %s505_s10 }
   0xa   : > { %p26_p1 = scmp.eq.s32.totalorder %s25_s17, 0  ;;  %p36_p2 = scmp.eq.s32.totalorder %s513_s12, 0 }
   0xb   : > { %p41_p3 = scmp.ne.s32.totalorder %s505_s10, %s501_s9  ;;  %p42_p4 = scmp.eq.s32.totalorder %s554_s13, 0 }
   0xc   : > { %s570_s18 = scalar_select %p26_p1, %s509_s11, %s28_s16  }
   0xd   : > { %p572_p5 = por %p36_p2, %p35_p0  ;;  %p576_p6 = por %p42_p4, %p41_p3 }
   0xe   : > { %p91_p7 = scmp.eq.s32.totalorder %s554_s13, 1  ;;  %p97_p8 = scmp.eq.s32.totalorder %s315_s14, 1 }
   0xf   : > { %s748_s20 = scalar_select %p576_p6, 1, 0 }
  0x10   : > { %p347_p10 = scmp.lt.s32.totalorder %s513_s12, 2  ;;  %p583_p11 = por %p91_p7, %p35_p0 }
  0x11   : > { %p587_p12 = por %p97_p8, %p41_p3  ;;  %s592_s23 = sand.u32 1, %s509_s11  }
  0x12   : > { %s749_s21 = scalar_select %p583_p11, 1, 0 }
  0x13   : > { %s750_s22 = scalar_select %p587_p12, 1, 0 }
  0x14   : > { %s319_s24 = sshll.u32 %s513_s12, 7  ;;  %s318_s25 = sshll.u32 %s592_s23, 3 }
  0x15   : > { %s601_s28 = scalar_lea.hbm %s742_s0, %s319_s24  ;;  %s121_s29 = scalar_lea.vmem [#allocation2], %s318_s25 }
  0x16   : > { %s128_s30 = sshll.u32 %s121_s29, 4  ;;  %p607_p13 = pnand %p347_p10, %p572_p5  ;;  %s611_s30 = int_to_ptr.vmem [resolvable:$true] %s128_s30 }
  0x17   : > { %s118_s4 = scalar_lea.sflag [#allocation3], %s592_s23  ;;  %s383_s5 = scalar_lea.hbm %s601_s28, 128 }
  0x18   : > { %p384_p2 = scmp.ne.s32.totalorder %s601_s28, %s383_s5  ;;  %p385_p3 = pneg %p607_p13 }
  0x19   : > { %s388_s8 = scalar_lea.hbm %s742_s0, 256  ;;  %p389_p5 = scmp.lt.u32.totalorder %s601_s28, %s742_s0 }
  0x1a   : > { %p386_p4 = pnand %p385_p3, %p384_p2  ;;  %p390_p8 = scmp.lt.u32.totalorder %s388_s8, %s383_s5 }
  0x1b   : > { %p392_p9 = scmp.lt.u32.totalorder %s383_s5, %s601_s28 }
  0x1c   : > { %p387_p7 = pneg %p386_p4  ;;  %p391_p10 = por %p390_p8, %p389_p5 }
  0x1e   : > { %p393_p0 = por %p392_p9, %p391_p10 }
  0x20   : > { %p394_p1 = pnand %p393_p0, %p387_p7 }
  0x22   : > { %397 = shalt.err (!%p394_p1)
}
  0x23   : > { %s398_s17 = scalar_lea.vmem %s611_s30, 128  ;;  %s515_s19 = smov [#allocation2]  }
  0x24   : > { %p399_p2 = scmp.ne.s32.totalorder %s611_s30, %s398_s17  ;;  %s403_s26 = sshll.u32 %s515_s19, 4  ;;  %s404_s26 = int_to_ptr.vmem [resolvable:$false] %s403_s26 }
  0x25   : > { %s405_s27 = scalar_lea.vmem %s404_s26, 256  ;;  %p406_p11 = scmp.lt.s32.totalorder %s611_s30, %s404_s26 }
  0x26   : > { %p401_p4 = pnand %p399_p2, %p385_p3  ;;  %p407_p5 = scmp.lt.s32.totalorder %s405_s27, %s398_s17 }
  0x28   : > { %p402_p12 = pneg %p401_p4  ;;  %p408_p8 = por %p407_p5, %p406_p11 }
  0x2a   : > { %p409_p9 = pnand %p408_p8, %p402_p12 }
  0x2c   : > { %412 = shalt.err (!%p409_p9)
}
  0x2d   : > { %339 = dma.hbm_to_vmem [thread:$0]  (!%p607_p13), %s601_s28, 128, %s611_s30, %s118_s4  }
  0x2e   : > { %p752_p0 = scmp.lt.s32.totalorder %s513_s12, 3  ;;  %p753_p1 = scmp.ge.s32.totalorder %s513_s12, 1 }
  0x2f   : > { %s654_s7 = scalar_lea.hbm %s743_s1, %s319_s24  ;;  %s139_s8 = scalar_lea.vmem [#allocation5], %s318_s25 }
  0x30   : > { %p645_p7 = pnand %p753_p1, %p752_p0  ;;  %s146_s14 = sshll.u32 %s139_s8, 4  ;;  %s147_s14 = int_to_ptr.vmem [resolvable:$true] %s146_s14 }
  0x31   : > { %s136_s28 = scalar_lea.sflag [#allocation6], %s592_s23  ;;  %s413_s30 = scalar_lea.hbm %s654_s7, 128 }
  0x32   : > { %s754_s29 = scalar_select %p645_p7, 1, 0 }
  0x33   : > { %p414_p11 = scmp.ne.s32.totalorder %s654_s7, %s413_s30  ;;  %s418_s24 = scalar_lea.hbm %s743_s1, 256 }
  0x34   : > { %p419_p2 = scmp.lt.u32.totalorder %s654_s7, %s743_s1  ;;  %p420_p4 = scmp.lt.u32.totalorder %s418_s24, %s413_s30 }
  0x35   : > { %p416_p12 = pnand %p414_p11, %p385_p3  ;;  %p422_p8 = scmp.lt.u32.totalorder %s413_s30, %s654_s7 }
  0x36   : > { %p421_p5 = por %p420_p4, %p419_p2 }
  0x37   : > { %p417_p10 = pneg %p416_p12 }
  0x38   : > { %p423_p9 = por %p422_p8, %p421_p5 }
  0x3a   : > { %p424_p0 = pnand %p423_p9, %p417_p10 }
  0x3c   : > { %427 = shalt.err (!%p424_p0)
}
  0x3d   : > { %s428_s23 = scalar_lea.vmem %s147_s14, 128  ;;  %s516_s25 = smov [#allocation5]  }
  0x3e   : > { %p429_p1 = scmp.ne.s32.totalorder %s147_s14, %s428_s23  ;;  %s433_s26 = sshll.u32 %s516_s25, 4  ;;  %s434_s26 = int_to_ptr.vmem [resolvable:$false] %s433_s26 }
  0x3f   : > { %s435_s27 = scalar_lea.vmem %s434_s26, 256  ;;  %p436_p6 = scmp.lt.s32.totalorder %s147_s14, %s434_s26 }
  0x40   : > { %p431_p11 = pnand %p429_p1, %p385_p3  ;;  %p437_p7 = scmp.lt.s32.totalorder %s435_s27, %s428_s23 }
  0x42   : > { %p432_p12 = pneg %p431_p11  ;;  %p438_p2 = por %p437_p7, %p436_p6 }
  0x44   : > { %p439_p4 = pnand %p438_p2, %p432_p12 }
  0x46   : > { %442 = shalt.err (!%p439_p4)
}
  0x47   : > { %342 = dma.hbm_to_vmem [thread:$0]  (!%p607_p13), %s654_s7, 128, %s147_s14, %s136_s28  }
  0x48   : > { %p755_p10 = scmp.ne.s32.totalorder %s754_s29, 0 }
  0x49   : > { %s681_s5 = sand.u32 (!%p755_p10), 1, %s505_s10   ;;  %p756_p3 = scmp.ne.s32.totalorder (!%p755_p10), %s748_s20, 0 }
  0x4a   : > { %155 = sbr.rel (%p755_p10) target bundleno = 119 (0x77), region = 28  ;;  %s323_s6 = sshll.u32 (!%p755_p10), %s681_s5, 3 }
  0x4b   : > { %s158_s8 = scalar_lea.sflag (!%p755_p10), [#allocation3], %s681_s5  ;;  %s161_s30 = scalar_lea.vmem (!%p755_p10), [#allocation2], %s323_s6 }
  0x51   : > { %488 = dma.done.wait (%p756_p3), %s158_s8, 128  }
  0x52   : > { %490 = vsyncadd (%p756_p3), %s158_s8, 4294967168  ;;  %s167_s3 = scalar_lea.sflag [#allocation6], %s681_s5  ;;  %s170_s7 = scalar_lea.vmem [#allocation5], %s323_s6 }
  0x53   : > { %492 = dma.done.wait (%p756_p3), %s167_s3, 128  }
  0x54   : > { %494 = vsyncadd (%p756_p3), %s167_s3, 4294967168  ;;  %v196_v0 = vld [vmem:[%s161_s30] sm:$0xff]  ;;  %v197_v1 = vld [vmem:[%s170_s7] sm:$0xff]  ;;  %s195_s29 = scalar_lea.vmem [#allocation7], %s323_s6  ;;  %s327_s28 = sshll.u32 %s554_s13, 7 }
  0x55   : > { %vm198_vm0 = vcmp.ne.s32.totalorder %v197_v1, 0  ;;  %v199_v2 = vsub.f32 1.0, %v196_v0  ;;  %s222_s14 = sshll.u32 %s195_s29, 4  ;;  %s700_s16 = scalar_lea.hbm %s744_s2, %s327_s28  ;;  %s695_s14 = int_to_ptr.vmem [resolvable:$true] %s222_s14 }
  0x56   : > { %s209_s24 = scalar_lea.sflag [#allocation4], %s681_s5  ;;  %s443_s17 = scalar_lea.vmem %s695_s14, 128 }
  0x57   : > { %v200_v3 = vsel %vm198_vm0, %v196_v0, %v199_v2  ;;  %p444_p6 = scmp.ne.s32.totalorder %s695_s14, %s443_s17  ;;  %p757_p13 = scmp.ne.s32.totalorder %s749_s21, 0 }
  0x58   : > { %381 = vlog2.f32 %v200_v3  ;;  %s517_s13 = smov [#allocation7]  }
  0x59   : > { %p445_p7 = pnand %p444_p6, %p757_p13  ;;  %s447_s19 = sshll.u32 %s517_s13, 4  ;;  %s448_s19 = int_to_ptr.vmem [resolvable:$false] %s447_s19 }
  0x5a   : > { %s449_s23 = scalar_lea.vmem %s448_s19, 256  ;;  %p450_p8 = scmp.lt.s32.totalorder %s695_s14, %s448_s19 }
  0x5b   : > { %p446_p5 = pneg %p445_p7  ;;  %p451_p9 = scmp.lt.s32.totalorder %s449_s23, %s443_s17 }
  0x5d   : > { %p452_p0 = por %p451_p9, %p450_p8 }
  0x5f   : > { %p453_p1 = pnand %p452_p0, %p446_p5 }
  0x62   : > { %v382_v4 = vpop.eup %381 }
  0x63   : > { %v202_v5 = vmul.f32 0.6931472, %v382_v4 }
  0x65   : > { %v203_v6 = vmax.f32 %v202_v5, -100.0 }
  0x67   : > { %v204_v7 = vsub.f32 0.0, %v203_v6 }
  0x69   : > { %207 = vst [vmem:[%s195_s29] sm:$0xff] %v204_v7 }
  0x6a   : > { %456 = shalt.err (!%p453_p1)
}
  0x6b   : > { %s457_s25 = scalar_lea.hbm %s700_s16, 128  ;;  %s461_s5 = scalar_lea.hbm %s744_s2, 256 }
  0x6c   : > { %p458_p11 = scmp.ne.s32.totalorder %s700_s16, %s457_s25  ;;  %p462_p4 = scmp.lt.u32.totalorder %s700_s16, %s744_s2 }
  0x6d   : > { %p463_p10 = scmp.lt.u32.totalorder %s461_s5, %s457_s25  ;;  %p465_p6 = scmp.lt.u32.totalorder %s457_s25, %s700_s16 }
  0x6e   : > { %p459_p12 = pnand %p458_p11, %p757_p13 }
  0x6f   : > { %p464_p3 = por %p463_p10, %p462_p4 }
  0x70   : > { %p460_p2 = pneg %p459_p12 }
  0x71   : > { %p466_p7 = por %p465_p6, %p464_p3 }
  0x73   : > { %p467_p5 = pnand %p466_p7, %p460_p2 }
  0x75   : > { %470 = shalt.err (!%p467_p5)
}
  0x76   : > { %334 = dma.vmem_to_hbm [thread:$0]  (%p757_p13), %s695_s14, 128, %s700_s16, %s209_s24  }
  0x77 PF: > { %s234_s30 = sand.u32 1, %s501_s9   ;;  %p758_p8 = scmp.ne.s32.totalorder %s750_s22, 0 }
  0x78   : > { %p759_p9 = scmp.ge.s32.totalorder %s513_s12, 2  ;;  %s235_s3 = scalar_lea.sflag [#allocation4], %s234_s30 }
  0x7a   : > { %p344_p0 = pnand %p759_p9, %p758_p8 }
  0x7c   : > { %496 = dma.done.wait (!%p344_p0), %s235_s3, 128  }
  0x7d   : > { %498 = vsyncadd (!%p344_p0), %s235_s3, 4294967168  ;;  %p18_p1 = scmp.ge.s32.totalorder %s558_s15, 4   ;;  %s760_s9 = smov %s505_s10 }
  0x7e   : > { %s761_s10 = smov %s509_s11  ;;  %s762_s11 = smov %s570_s18 }
  0x7f   : > { %s763_s12 = smov %s558_s15  ;;  %20 = sbr.rel (!%p18_p1) target bundleno = 7 (0x7), region = 86 }
  0x86   :  { %240 = vsyncpa [#allocation3], 1 }
  0x87   :  { %242 = vsyncpa [#allocation3 + $0x1], 1 }
  0x88   :  { %243 = vsyncpa [#allocation6], 1 }
  0x89   :  { %245 = vsyncpa [#allocation6 + $0x1], 1 }
  0x8a   :  { %246 = vsyncpa [#allocation4], 1 }
  0x8b   :  { %248 = vsyncpa [#allocation4 + $0x1], 1 }

</bundles_post_ra>
